<compile_context>
chip_gen: v7x
topology: tpu7x:2x2x1
jax: 0.10.0
libtpu: 0.0.40
codegen_flags: <defaults>
</compile_context>

<pallas_src>
import jax
import jax.numpy as jnp
from jax.experimental import pallas as pl
from jax.experimental.pallas import tpu as pltpu


# ----------------------------------------------------------------------------
# Fused kernel: Conv1d + ReLU + BatchNorm1d + multi-layer LSTM + Linear.
# ----------------------------------------------------------------------------
def make_fused_kernel(*, B, L_out, F, K, H, NL, C):
    BT = L_out * B

    def kernel(*refs):
        (xim_ref, wconv_ref, bconv_ref, gamma_ref, beta_ref,
         lenv_ref, tstop_ref) = refs[:7]
        lstm_refs = refs[7:7 + 2 * NL]          # per layer: stacked W, bias row
        (wcls_ref, bcls_ref, out_ref, y_scr, xh_scr, c_scr) = refs[7 + 2 * NL:]

        # ---- Conv1d: single MXU issue on the host-side im2col slab ----------
        acc = jnp.dot(xim_ref[...], wconv_ref[...],
                      preferred_element_type=jnp.float32)          # (BT, F)
        y = jnp.maximum(acc + bconv_ref[...], 0.0)                 # + bias, ReLU

        # ---- BatchNorm1d, training-mode batch stats (two-pass, f32) ---------
        inv_n = 1.0 / float(BT)
        mean = jnp.sum(y, axis=0, keepdims=True) * inv_n
        d = y - mean
        var = jnp.sum(d * d, axis=0, keepdims=True) * inv_n        # biased var
        y_scr[...] = (d * (gamma_ref[...] * jax.lax.rsqrt(var + 1e-5))
                      + beta_ref[...])                             # (BT, F) f32

        # ---- multi-layer LSTM over time with packed-sequence masking --------
        xh_scr[...] = jnp.zeros_like(xh_scr)     # [x_t | h_0 | ... | h_{NL-1}]
        c_scr[...] = jnp.zeros_like(c_scr)
        len_vec = lenv_ref[...]                  # (B, 1) i32, loaded once
        biases = [jnp.broadcast_to(lstm_refs[2 * l + 1][...], (B, 4 * H))
                  for l in range(NL)]            # hoisted broadcasts
        t_stop = tstop_ref[0]                    # max(lengths) clamped to L_out

        @pl.loop(0, t_stop)
        def _step(t):
            # x_t -> lanes [0, F) of the state slab (one small copy per step).
            xh_scr[:, 0:F] = y_scr[pl.ds(pl.multiple_of(t * B, B), B),
                                   :].astype(xh_scr.dtype)
            mask_bh = jnp.broadcast_to(t < len_vec, (B, H))  # one broadcast/step
            for layer in range(NL):
                in_dim = F if layer == 0 else H
                off = 0 if layer == 0 else F + (layer - 1) * H
                h_off = F + layer * H
                h_prev = xh_scr[:, h_off:h_off + H].astype(jnp.float32)
                c_prev = c_scr[layer]
                # one MXU issue per layer: [x | h_prev] @ [[W_ih],[W_hh]]
                gates = (jnp.dot(xh_scr[:, off:off + in_dim + H],
                                 lstm_refs[2 * layer][...],
                                 preferred_element_type=jnp.float32)
                         + biases[layer])        # (B, 4H), columns i, f, o, g
                sig = jax.nn.sigmoid(gates[:, 0:3 * H])   # i, f, o (one EUP slab)
                g_g = jnp.tanh(gates[:, 3 * H:4 * H])     # g
                i_g = sig[:, 0:H]
                f_g = sig[:, H:2 * H]
                o_g = sig[:, 2 * H:3 * H]
                c_new = f_g * c_prev + i_g * g_g
                h_new = o_g * jnp.tanh(c_new)
                h_new = jnp.where(mask_bh, h_new, h_prev)  # freeze past lengths[b]
                c_new = jnp.where(mask_bh, c_new, c_prev)
                c_scr[layer] = c_new
                xh_scr[:, h_off:h_off + H] = h_new.astype(xh_scr.dtype)

        # ---- classifier on the last layer's final hidden state --------------
        h_last = xh_scr[:, F + (NL - 1) * H:F + NL * H]
        out_ref[...] = (jnp.dot(h_last, wcls_ref[...],
                                preferred_element_type=jnp.float32)
                        + bcls_ref[...])

    return kernel


def _vmem_limit_bytes():
    # Generation-aware scoped-VMEM budget: leave ~8 MiB headroom under the
    # physical capacity, capped at 100 MiB (v5e/v6e have 128 MiB, v7x 64 MiB).
    try:
        info = pltpu.get_tpu_info()
        cap = int(getattr(info, "vmem_capacity_bytes", 0) or 0)
        if cap > 0:
            return max(min(cap - 8 * 1024 * 1024, 100 * 1024 * 1024),
                       16 * 1024 * 1024)
    except Exception:
        pass
    return 32 * 1024 * 1024


# ----------------------------------------------------------------------------
# Model wrapper (parameter setup + host-side layout prep in plain JAX).
# ----------------------------------------------------------------------------
class ConvLSTMPallas:
    def __init__(self, input_size, extracted_features, kernel_size, padding,
                 hidden_size, num_layers, num_classes, key):
        self.input_size = input_size
        self.extracted_features = extracted_features
        self.kernel_size = kernel_size
        self.padding = padding
        self.hidden_size = hidden_size
        self.num_layers = num_layers
        self.num_classes = num_classes

        keys = jax.random.split(key, 4 + 4 * num_layers)
        F, Cin, K, H, C = (extracted_features, input_size, kernel_size,
                           hidden_size, num_classes)
        self.conv_w = 0.3 * jax.random.normal(keys[0], (F, Cin, K), jnp.float32)
        self.conv_b = 0.1 * jax.random.normal(keys[1], (F,), jnp.float32)
        self.bn_gamma = 1.0 + 0.1 * jax.random.normal(keys[2], (F,), jnp.float32)
        self.bn_beta = 0.1 * jax.random.normal(keys[3], (F,), jnp.float32)

        self.lstm_params = []
        for layer in range(num_layers):
            in_dim = F if layer == 0 else H
            k0, k1, k2, k3 = keys[4 + 4 * layer: 8 + 4 * layer]
            scale = 1.0 / jnp.sqrt(jnp.float32(H))
            w_ih = scale * jax.random.normal(k0, (4 * H, in_dim), jnp.float32)
            w_hh = scale * jax.random.normal(k1, (4 * H, H), jnp.float32)
            b_ih = scale * jax.random.normal(k2, (4 * H,), jnp.float32)
            b_hh = scale * jax.random.normal(k3, (4 * H,), jnp.float32)
            self.lstm_params.append((w_ih, w_hh, b_ih, b_hh))

        kc = jax.random.fold_in(key, 777)
        self.cls_w = 0.2 * jax.random.normal(kc, (C, H), jnp.float32)
        self.cls_b = 0.05 * jax.random.normal(jax.random.fold_in(key, 778),
                                              (C,), jnp.float32)

    def __call__(self, x, lengths, mxu_dtype=jnp.bfloat16):
        # bf16 MXU operands by default (native operand dtype on v5e/v6e/v7x);
        # gate/state/BN math stays f32.  Pass mxu_dtype=jnp.float32 for a
        # strict-accuracy path.
        B, T, Cin = x.shape
        F, K, P = self.extracted_features, self.kernel_size, self.padding
        H, C, NL = self.hidden_size, self.num_classes, self.num_layers
        L_out = T + 2 * P - K + 1
        BT = L_out * B

        # Host-side im2col: tap k of the conv occupies lanes [k*Cin, (k+1)*Cin)
        # of a (L_out*B, K*Cin) LHS, so the conv is one MXU dot in-kernel.
        x_tm = jnp.transpose(x, (1, 0, 2))                  # (T, B, Cin)
        x_pad = jnp.pad(x_tm, ((P, P), (0, 0), (0, 0)))     # (T + 2P, B, Cin)
        taps = [x_pad[k:k + L_out].reshape(BT, Cin) for k in range(K)]
        xim = jnp.concatenate(taps, axis=1).astype(mxu_dtype)   # (BT, K*Cin)

        # (F, Cin, K) -> (K*Cin, F): row k*Cin + cin, col f = conv_w[f, cin, k].
        w_conv = (jnp.transpose(self.conv_w, (2, 1, 0))
                  .reshape(K * Cin, F).astype(mxu_dtype))

        lengths_i32 = lengths.astype(jnp.int32)
        t_stop = (jnp.minimum(jnp.max(lengths_i32), L_out)
                  .astype(jnp.int32).reshape((1,)))

        def reorder_ifog(w4h):
            # PyTorch gate order (i, f, g, o) -> (i, f, o, g): the three
            # sigmoid gates become one contiguous [:, :3H] slab in-kernel.
            return jnp.concatenate(
                [w4h[:, :2 * H], w4h[:, 3 * H:], w4h[:, 2 * H:3 * H]], axis=1)

        vmem = lambda: pl.BlockSpec(memory_space=pltpu.MemorySpace.VMEM)
        smem = lambda: pl.BlockSpec(memory_space=pltpu.MemorySpace.SMEM)

        args = [xim, w_conv,
                self.conv_b.reshape(1, F),
                self.bn_gamma.reshape(1, F),
                self.bn_beta.reshape(1, F),
                lengths_i32.reshape(B, 1),      # (B,1) vector for per-row masking
                t_stop]                         # SMEM scalar: loop trip count
        in_specs = [vmem() for _ in range(6)] + [smem()]

        for layer in range(NL):
            w_ih, w_hh, b_ih, b_hh = self.lstm_params[layer]
            # stacked weight: [x | h] @ [[W_ih],[W_hh]]  -> (in_dim + H, 4H)
            w_stack = jnp.concatenate([w_ih.T, w_hh.T], axis=0)
            args += [reorder_ifog(w_stack).astype(mxu_dtype),
                     reorder_ifog((b_ih + b_hh).reshape(1, 4 * H))]
            in_specs += [vmem(), vmem()]

        args += [self.cls_w.T.astype(mxu_dtype), self.cls_b.reshape(1, C)]
        in_specs += [vmem(), vmem()]

        kernel = make_fused_kernel(B=B, L_out=L_out, F=F, K=K, H=H, NL=NL, C=C)

        # TODO(synk): on v7x, split B across the two TensorCores (parallel grid
        # / core axis) with a cross-core reduction for the BatchNorm statistics.
        # TODO(synk): for production-sized L_out*B*F on v7x, keep the BN'd
        # activation slab in HBM (memory_space=pl.ANY) and double-buffer time
        # chunks into VMEM (or store the slab in bf16) instead of holding it
        # all resident in VMEM.
        return pl.pallas_call(
            kernel,
            out_shape=jax.ShapeDtypeStruct((B, C), jnp.float32),
            in_specs=in_specs,
            out_specs=pl.BlockSpec(memory_space=pltpu.MemorySpace.VMEM),
            scratch_shapes=[
                pltpu.VMEM((BT, F), jnp.float32),          # BN'd conv activations
                pltpu.VMEM((B, F + NL * H), mxu_dtype),    # [x_t | h_0 | .. | h_last]
                pltpu.VMEM((NL, B, H), jnp.float32),       # c state
            ],
            compiler_params=pltpu.CompilerParams(
                vmem_limit_bytes=_vmem_limit_bytes()),
        )(*args)


# ----------------------------------------------------------------------------
# Pure-JAX reference (mirrors the PyTorch forward semantics) for verification.
# ----------------------------------------------------------------------------
def reference_forward(model, x, lengths):
    B, T, _ = x.shape
    H, P = model.hidden_size, model.padding
    hp = jax.lax.Precision.HIGHEST
    x_cl = jnp.transpose(x, (0, 2, 1))
    y = jax.lax.conv_general_dilated(
        x_cl, model.conv_w, window_strides=(1,), padding=[(P, P)],
        dimension_numbers=("NCH", "OIH", "NCH"), precision=hp)
    y = jnp.maximum(y + model.conv_b[None, :, None], 0.0)
    mean = jnp.mean(y, axis=(0, 2))
    var = jnp.mean((y - mean[None, :, None]) ** 2, axis=(0, 2))
    y = (y - mean[None, :, None]) / jnp.sqrt(var[None, :, None] + 1e-5)
    y = y * model.bn_gamma[None, :, None] + model.bn_beta[None, :, None]
    y = jnp.transpose(y, (0, 2, 1))                               # (B, L, F)
    L_out = y.shape[1]

    h = [jnp.zeros((B, H), jnp.float32) for _ in range(model.num_layers)]
    c = [jnp.zeros((B, H), jnp.float32) for _ in range(model.num_layers)]
    for t in range(L_out):
        mask = (t < lengths)[:, None]
        inp = y[:, t, :]
        for layer in range(model.num_layers):
            w_ih, w_hh, b_ih, b_hh = model.lstm_params[layer]
            gates = (jnp.dot(inp, w_ih.T, precision=hp)
                     + jnp.dot(h[layer], w_hh.T, precision=hp) + b_ih + b_hh)
            i_g = jax.nn.sigmoid(gates[:, :H])
            f_g = jax.nn.sigmoid(gates[:, H:2 * H])
            g_g = jnp.tanh(gates[:, 2 * H:3 * H])
            o_g = jax.nn.sigmoid(gates[:, 3 * H:])
            c_new = f_g * c[layer] + i_g * g_g
            h_new = o_g * jnp.tanh(c_new)
            h[layer] = jnp.where(mask, h_new, h[layer])
            c[layer] = jnp.where(mask, c_new, c[layer])
            inp = h[layer]
    return jnp.dot(h[-1], model.cls_w.T, precision=hp) + model.cls_b


if __name__ == "__main__":
    key = jax.random.PRNGKey(0)
    k_param, k_data = jax.random.split(key)

    B, T, Cin = 8, 12, 6
    F, K, P = 16, 3, 1
    H, NL, C = 32, 2, 5

    model = ConvLSTMPallas(Cin, F, K, P, H, NL, C, k_param)
    x = jax.random.normal(k_data, (B, T, Cin), dtype=jnp.float32)
    # pack_padded_sequence default enforce_sorted=True -> descending lengths
    # (the kernel no longer depends on sortedness, but keep the same test data).
    lengths = jnp.array([12, 11, 10, 9, 8, 7, 6, 5], dtype=jnp.int32)

    ref = reference_forward(model, x, lengths)

    # f32 MXU operands: strict check against the reference.
    out_f32 = jax.block_until_ready(model(x, lengths, mxu_dtype=jnp.float32))
    if not jnp.allclose(out_f32, ref, rtol=2e-2, atol=2e-3):
        raise AssertionError(
            "f32 mismatch vs reference: max abs diff = "
            f"{jnp.max(jnp.abs(out_f32 - ref))}")

    # bf16 MXU operands (default path): loose sanity check.
    out_bf16 = jax.block_until_ready(model(x, lengths))
    max_diff = float(jnp.max(jnp.abs(out_bf16 - ref)))
    if (not bool(jnp.all(jnp.isfinite(out_bf16)))) or max_diff > 0.2:
        raise AssertionError(f"bf16 MXU path mismatch: max abs diff = {max_diff}")

    print("KERNEL_OK")
</pallas_src>

<mosaic_0001>
module attributes {stable_mosaic.version = 11 : i64} {
  func.func @kernel(%arg0: memref<96x18xf32, #tpu.memory_space<vmem>>, %arg1: memref<18x16xf32, #tpu.memory_space<vmem>>, %arg2: memref<1x16xf32, #tpu.memory_space<vmem>>, %arg3: memref<1x16xf32, #tpu.memory_space<vmem>>, %arg4: memref<1x16xf32, #tpu.memory_space<vmem>>, %arg5: memref<8x1xi32, #tpu.memory_space<vmem>>, %arg6: memref<1xi32, #tpu.memory_space<smem>>, %arg7: memref<48x128xf32, #tpu.memory_space<vmem>>, %arg8: memref<1x128xf32, #tpu.memory_space<vmem>>, %arg9: memref<64x128xf32, #tpu.memory_space<vmem>>, %arg10: memref<1x128xf32, #tpu.memory_space<vmem>>, %arg11: memref<32x5xf32, #tpu.memory_space<vmem>>, %arg12: memref<1x5xf32, #tpu.memory_space<vmem>>, %arg13: memref<8x5xf32, #tpu.memory_space<vmem>>, %arg14: memref<96x16xf32, #tpu.memory_space<vmem>>, %arg15: memref<8x80xf32, #tpu.memory_space<vmem>>, %arg16: memref<2x8x32xf32, #tpu.memory_space<vmem>>) attributes {dimension_semantics = [], scalar_prefetch = 0 : i64, scratch_operands = 3 : i64, tpu.core_type = #tpu.core_type<tc>} {
    %c0 = arith.constant 0 : index
    %c0_0 = arith.constant 0 : index
    %0 = vector.load %arg0[%c0, %c0_0] : memref<96x18xf32, #tpu.memory_space<vmem>>, vector<96x18xf32>
    %c0_1 = arith.constant 0 : index
    %c0_2 = arith.constant 0 : index
    %1 = vector.load %arg1[%c0_1, %c0_2] : memref<18x16xf32, #tpu.memory_space<vmem>>, vector<18x16xf32>
    %cst = arith.constant dense<0.000000e+00> : vector<96x16xf32>
    %2 = tpu.matmul %0, %1, %cst {dimension_numbers = #tpu.dot_dimension_numbers<[1], [0], [0], [1], [0, 0, 1, 1], [], []>} : vector<96x18xf32>, vector<18x16xf32>, vector<96x16xf32> -> vector<96x16xf32>
    %c0_3 = arith.constant 0 : index
    %c0_4 = arith.constant 0 : index
    %3 = vector.load %arg2[%c0_3, %c0_4] : memref<1x16xf32, #tpu.memory_space<vmem>>, vector<1x16xf32>
    %4 = vector.broadcast %3 : vector<1x16xf32> to vector<96x16xf32>
    %5 = arith.addf %2, %4 : vector<96x16xf32>
    %cst_5 = arith.constant 0.000000e+00 : f32
    %6 = vector.broadcast %cst_5 : f32 to vector<96x16xf32>
    %7 = arith.maximumf %5, %6 : vector<96x16xf32>
    %cst_6 = arith.constant dense<0.000000e+00> : vector<16xf32>
    %8 = vector.multi_reduction <add>, %7, %cst_6 [0] : vector<96x16xf32> to vector<16xf32>
    %9 = vector.shape_cast %8 : vector<16xf32> to vector<1x16xf32>
    %cst_7 = arith.constant 0.010416667 : f32
    %10 = vector.broadcast %cst_7 : f32 to vector<1x16xf32>
    %11 = arith.mulf %9, %10 : vector<1x16xf32>
    %12 = vector.broadcast %11 : vector<1x16xf32> to vector<96x16xf32>
    %13 = arith.subf %7, %12 : vector<96x16xf32>
    %14 = arith.mulf %13, %13 : vector<96x16xf32>
    %cst_8 = arith.constant dense<0.000000e+00> : vector<16xf32>
    %15 = vector.multi_reduction <add>, %14, %cst_8 [0] : vector<96x16xf32> to vector<16xf32>
    %16 = vector.shape_cast %15 : vector<16xf32> to vector<1x16xf32>
    %cst_9 = arith.constant 0.010416667 : f32
    %17 = vector.broadcast %cst_9 : f32 to vector<1x16xf32>
    %18 = arith.mulf %16, %17 : vector<1x16xf32>
    %c0_10 = arith.constant 0 : index
    %c0_11 = arith.constant 0 : index
    %19 = vector.load %arg3[%c0_10, %c0_11] : memref<1x16xf32, #tpu.memory_space<vmem>>, vector<1x16xf32>
    %cst_12 = arith.constant 9.99999974E-6 : f32
    %20 = vector.broadcast %cst_12 : f32 to vector<1x16xf32>
    %21 = arith.addf %18, %20 : vector<1x16xf32>
    %22 = math.rsqrt %21 : vector<1x16xf32>
    %23 = arith.mulf %19, %22 : vector<1x16xf32>
    %24 = vector.broadcast %23 : vector<1x16xf32> to vector<96x16xf32>
    %25 = arith.mulf %13, %24 : vector<96x16xf32>
    %c0_13 = arith.constant 0 : index
    %c0_14 = arith.constant 0 : index
    %26 = vector.load %arg4[%c0_13, %c0_14] : memref<1x16xf32, #tpu.memory_space<vmem>>, vector<1x16xf32>
    %27 = vector.broadcast %26 : vector<1x16xf32> to vector<96x16xf32>
    %28 = arith.addf %25, %27 : vector<96x16xf32>
    %c0_15 = arith.constant 0 : index
    %c0_16 = arith.constant 0 : index
    %29 = vector.load %arg14[%c0_15, %c0_16] : memref<96x16xf32, #tpu.memory_space<vmem>>, vector<96x16xf32>
    tpu.vector_store %arg14[%c0_15, %c0_16], %28 {strides = array<i32>} : memref<96x16xf32, #tpu.memory_space<vmem>>, vector<96x16xf32>,
    %cst_17 = arith.constant 0.000000e+00 : f32
    %30 = vector.broadcast %cst_17 : f32 to vector<8x80xf32>
    %c0_18 = arith.constant 0 : index
    %c0_19 = arith.constant 0 : index
    %31 = vector.load %arg15[%c0_18, %c0_19] : memref<8x80xf32, #tpu.memory_space<vmem>>, vector<8x80xf32>
    tpu.vector_store %arg15[%c0_18, %c0_19], %30 {strides = array<i32>} : memref<8x80xf32, #tpu.memory_space<vmem>>, vector<8x80xf32>,
    %cst_20 = arith.constant 0.000000e+00 : f32
    %32 = vector.broadcast %cst_20 : f32 to vector<2x8x32xf32>
    %c0_21 = arith.constant 0 : index
    %c0_22 = arith.constant 0 : index
    %c0_23 = arith.constant 0 : index
    %33 = vector.load %arg16[%c0_21, %c0_22, %c0_23] : memref<2x8x32xf32, #tpu.memory_space<vmem>>, vector<2x8x32xf32>
    tpu.vector_store %arg16[%c0_21, %c0_22, %c0_23], %32 {strides = array<i32>} : memref<2x8x32xf32, #tpu.memory_space<vmem>>, vector<2x8x32xf32>,
    %c0_24 = arith.constant 0 : index
    %c0_25 = arith.constant 0 : index
    %34 = vector.load %arg5[%c0_24, %c0_25] : memref<8x1xi32, #tpu.memory_space<vmem>>, vector<8x1xi32>
    %c0_26 = arith.constant 0 : index
    %c0_27 = arith.constant 0 : index
    %35 = vector.load %arg8[%c0_26, %c0_27] : memref<1x128xf32, #tpu.memory_space<vmem>>, vector<1x128xf32>
    %36 = vector.shape_cast %35 : vector<1x128xf32> to vector<1x128xf32>
    %37 = vector.broadcast %36 : vector<1x128xf32> to vector<8x128xf32>
    %c0_28 = arith.constant 0 : index
    %c0_29 = arith.constant 0 : index
    %38 = vector.load %arg10[%c0_28, %c0_29] : memref<1x128xf32, #tpu.memory_space<vmem>>, vector<1x128xf32>
    %39 = vector.shape_cast %38 : vector<1x128xf32> to vector<1x128xf32>
    %40 = vector.broadcast %39 : vector<1x128xf32> to vector<8x128xf32>
    %c0_30 = arith.constant 0 : index
    %41 = memref.load %arg6[%c0_30] : memref<1xi32, #tpu.memory_space<smem>>
    %c0_i32 = arith.constant 0 : i32
    %42 = arith.subi %41, %c0_i32 : i32
    %c1_i32 = arith.constant 1 : i32
    %c1_i32_31 = arith.constant 1 : i32
    %43 = arith.subi %c1_i32, %c1_i32_31 : i32
    %44 = arith.addi %42, %43 : i32
    %c1_i32_32 = arith.constant 1 : i32
    %45 = arith.divsi %44, %c1_i32_32 : i32
    %c1_i32_33 = arith.constant 1 : i32
    %c0_i32_34 = arith.constant 0 : i32
    %c0_i32_35 = arith.constant 0 : i32
    %46 = arith.subi %45, %c0_i32_35 : i32
    %47 = arith.addi %c0_i32_35, %46 : i32
    %c1_i32_36 = arith.constant 1 : i32
    scf.for %arg17 = %c0_i32_35 to %47 step %c1_i32_36  : i32 {
      %55 = arith.muli %arg17, %c1_i32_33 : i32
      %56 = arith.addi %c0_i32_34, %55 : i32
      %c8_i32 = arith.constant 8 : i32
      %57 = arith.muli %56, %c8_i32 : i32
      %58 = tpu.assume_multiple %57, 8 : i32
      %59 = arith.index_cast %58 : i32 to index
      %c0_45 = arith.constant 0 : index
      %60 = vector.load %arg14[%59, %c0_45] : memref<96x16xf32, #tpu.memory_space<vmem>>, vector<8x16xf32>
      %c0_46 = arith.constant 0 : index
      %c0_47 = arith.constant 0 : index
      %61 = vector.load %arg15[%c0_46, %c0_47] : memref<8x80xf32, #tpu.memory_space<vmem>>, vector<8x16xf32>
      tpu.vector_store %arg15[%c0_46, %c0_47], %60 {strides = array<i32>} : memref<8x80xf32, #tpu.memory_space<vmem>>, vector<8x16xf32>,
      %62 = vector.broadcast %56 : i32 to vector<8x1xi32>
      %63 = arith.cmpi slt, %62, %34 : vector<8x1xi32>
      %64 = vector.shape_cast %63 : vector<8x1xi1> to vector<8x1xi1>
      %65 = vector.broadcast %64 : vector<8x1xi1> to vector<8x32xi1>
      %c0_48 = arith.constant 0 : index
      %c16 = arith.constant 16 : index
      %66 = vector.load %arg15[%c0_48, %c16] : memref<8x80xf32, #tpu.memory_space<vmem>>, vector<8x32xf32>
      %c0_49 = arith.constant 0 : index
      %c0_50 = arith.constant 0 : index
      %c0_51 = arith.constant 0 : index
      %67 = vector.load %arg16[%c0_49, %c0_50, %c0_51] : memref<2x8x32xf32, #tpu.memory_space<vmem>>, vector<1x8x32xf32>
      %68 = vector.shape_cast %67 : vector<1x8x32xf32> to vector<8x32xf32>
      %c0_52 = arith.constant 0 : index
      %c0_53 = arith.constant 0 : index
      %69 = vector.load %arg15[%c0_52, %c0_53] : memref<8x80xf32, #tpu.memory_space<vmem>>, vector<8x48xf32>
      %c0_54 = arith.constant 0 : index
      %c0_55 = arith.constant 0 : index
      %70 = vector.load %arg7[%c0_54, %c0_55] : memref<48x128xf32, #tpu.memory_space<vmem>>, vector<48x128xf32>
      %cst_56 = arith.constant dense<0.000000e+00> : vector<8x128xf32>
      %71 = tpu.matmul %69, %70, %cst_56 {dimension_numbers = #tpu.dot_dimension_numbers<[1], [0], [0], [1], [0, 0, 1, 1], [], []>} : vector<8x48xf32>, vector<48x128xf32>, vector<8x128xf32> -> vector<8x128xf32>
      %72 = arith.addf %71, %37 : vector<8x128xf32>
      %73 = vector.extract_strided_slice %72 {offsets = [0, 0], sizes = [8, 96], strides = [1, 1]} : vector<8x128xf32> to vector<8x96xf32>
      %74 = arith.negf %73 : vector<8x96xf32>
      %75 = math.exp %74 : vector<8x96xf32>
      %cst_57 = arith.constant 1.000000e+00 : f32
      %76 = vector.broadcast %cst_57 : f32 to vector<8x96xf32>
      %77 = arith.addf %76, %75 : vector<8x96xf32>
      %78 = arith.divf %76, %77 : vector<8x96xf32>
      %79 = vector.extract_strided_slice %72 {offsets = [0, 96], sizes = [8, 32], strides = [1, 1]} : vector<8x128xf32> to vector<8x32xf32>
      %80 = math.tanh %79 : vector<8x32xf32>
      %81 = vector.extract_strided_slice %78 {offsets = [0, 0], sizes = [8, 32], strides = [1, 1]} : vector<8x96xf32> to vector<8x32xf32>
      %82 = vector.extract_strided_slice %78 {offsets = [0, 32], sizes = [8, 32], strides = [1, 1]} : vector<8x96xf32> to vector<8x32xf32>
      %83 = vector.extract_strided_slice %78 {offsets = [0, 64], sizes = [8, 32], strides = [1, 1]} : vector<8x96xf32> to vector<8x32xf32>
      %84 = arith.mulf %82, %68 : vector<8x32xf32>
      %85 = arith.mulf %81, %80 : vector<8x32xf32>
      %86 = arith.addf %84, %85 : vector<8x32xf32>
      %87 = math.tanh %86 : vector<8x32xf32>
      %88 = arith.mulf %83, %87 : vector<8x32xf32>
      %89 = arith.select %65, %88, %66 : vector<8x32xi1>, vector<8x32xf32>
      %90 = arith.select %65, %86, %68 : vector<8x32xi1>, vector<8x32xf32>
      %c0_58 = arith.constant 0 : index
      %c0_59 = arith.constant 0 : index
      %c0_60 = arith.constant 0 : index
      %91 = vector.load %arg16[%c0_58, %c0_59, %c0_60] : memref<2x8x32xf32, #tpu.memory_space<vmem>>, vector<1x8x32xf32>
      %92 = vector.shape_cast %91 : vector<1x8x32xf32> to vector<8x32xf32>
      %93 = vector.shape_cast %90 : vector<8x32xf32> to vector<1x8x32xf32>
      tpu.vector_store %arg16[%c0_58, %c0_59, %c0_60], %93 {strides = array<i32>} : memref<2x8x32xf32, #tpu.memory_space<vmem>>, vector<1x8x32xf32>,
      %c0_61 = arith.constant 0 : index
      %c16_62 = arith.constant 16 : index
      %94 = vector.load %arg15[%c0_61, %c16_62] : memref<8x80xf32, #tpu.memory_space<vmem>>, vector<8x32xf32>
      tpu.vector_store %arg15[%c0_61, %c16_62], %89 {strides = array<i32>} : memref<8x80xf32, #tpu.memory_space<vmem>>, vector<8x32xf32>,
      %c0_63 = arith.constant 0 : index
      %c48_64 = arith.constant 48 : index
      %95 = vector.load %arg15[%c0_63, %c48_64] : memref<8x80xf32, #tpu.memory_space<vmem>>, vector<8x32xf32>
      %c1 = arith.constant 1 : index
      %c0_65 = arith.constant 0 : index
      %c0_66 = arith.constant 0 : index
      %96 = vector.load %arg16[%c1, %c0_65, %c0_66] : memref<2x8x32xf32, #tpu.memory_space<vmem>>, vector<1x8x32xf32>
      %97 = vector.shape_cast %96 : vector<1x8x32xf32> to vector<8x32xf32>
      %c0_67 = arith.constant 0 : index
      %c16_68 = arith.constant 16 : index
      %98 = vector.load %arg15[%c0_67, %c16_68] : memref<8x80xf32, #tpu.memory_space<vmem>>, vector<8x64xf32>
      %c0_69 = arith.constant 0 : index
      %c0_70 = arith.constant 0 : index
      %99 = vector.load %arg9[%c0_69, %c0_70] : memref<64x128xf32, #tpu.memory_space<vmem>>, vector<64x128xf32>
      %cst_71 = arith.constant dense<0.000000e+00> : vector<8x128xf32>
      %100 = tpu.matmul %98, %99, %cst_71 {dimension_numbers = #tpu.dot_dimension_numbers<[1], [0], [0], [1], [0, 0, 1, 1], [], []>} : vector<8x64xf32>, vector<64x128xf32>, vector<8x128xf32> -> vector<8x128xf32>
      %101 = arith.addf %100, %40 : vector<8x128xf32>
      %102 = vector.extract_strided_slice %101 {offsets = [0, 0], sizes = [8, 96], strides = [1, 1]} : vector<8x128xf32> to vector<8x96xf32>
      %103 = arith.negf %102 : vector<8x96xf32>
      %104 = math.exp %103 : vector<8x96xf32>
      %cst_72 = arith.constant 1.000000e+00 : f32
      %105 = vector.broadcast %cst_72 : f32 to vector<8x96xf32>
      %106 = arith.addf %105, %104 : vector<8x96xf32>
      %107 = arith.divf %105, %106 : vector<8x96xf32>
      %108 = vector.extract_strided_slice %101 {offsets = [0, 96], sizes = [8, 32], strides = [1, 1]} : vector<8x128xf32> to vector<8x32xf32>
      %109 = math.tanh %108 : vector<8x32xf32>
      %110 = vector.extract_strided_slice %107 {offsets = [0, 0], sizes = [8, 32], strides = [1, 1]} : vector<8x96xf32> to vector<8x32xf32>
      %111 = vector.extract_strided_slice %107 {offsets = [0, 32], sizes = [8, 32], strides = [1, 1]} : vector<8x96xf32> to vector<8x32xf32>
      %112 = vector.extract_strided_slice %107 {offsets = [0, 64], sizes = [8, 32], strides = [1, 1]} : vector<8x96xf32> to vector<8x32xf32>
      %113 = arith.mulf %111, %97 : vector<8x32xf32>
      %114 = arith.mulf %110, %109 : vector<8x32xf32>
      %115 = arith.addf %113, %114 : vector<8x32xf32>
      %116 = math.tanh %115 : vector<8x32xf32>
      %117 = arith.mulf %112, %116 : vector<8x32xf32>
      %118 = arith.select %65, %117, %95 : vector<8x32xi1>, vector<8x32xf32>
      %119 = arith.select %65, %115, %97 : vector<8x32xi1>, vector<8x32xf32>
      %c1_73 = arith.constant 1 : index
      %c0_74 = arith.constant 0 : index
      %c0_75 = arith.constant 0 : index
      %120 = vector.load %arg16[%c1_73, %c0_74, %c0_75] : memref<2x8x32xf32, #tpu.memory_space<vmem>>, vector<1x8x32xf32>
      %121 = vector.shape_cast %120 : vector<1x8x32xf32> to vector<8x32xf32>
      %122 = vector.shape_cast %119 : vector<8x32xf32> to vector<1x8x32xf32>
      tpu.vector_store %arg16[%c1_73, %c0_74, %c0_75], %122 {strides = array<i32>} : memref<2x8x32xf32, #tpu.memory_space<vmem>>, vector<1x8x32xf32>,
      %c0_76 = arith.constant 0 : index
      %c48_77 = arith.constant 48 : index
      %123 = vector.load %arg15[%c0_76, %c48_77] : memref<8x80xf32, #tpu.memory_space<vmem>>, vector<8x32xf32>
      tpu.vector_store %arg15[%c0_76, %c48_77], %118 {strides = array<i32>} : memref<8x80xf32, #tpu.memory_space<vmem>>, vector<8x32xf32>,
    }
    %c0_37 = arith.constant 0 : index
    %c48 = arith.constant 48 : index
    %48 = vector.load %arg15[%c0_37, %c48] : memref<8x80xf32, #tpu.memory_space<vmem>>, vector<8x32xf32>
    %c0_38 = arith.constant 0 : index
    %c0_39 = arith.constant 0 : index
    %49 = vector.load %arg11[%c0_38, %c0_39] : memref<32x5xf32, #tpu.memory_space<vmem>>, vector<32x5xf32>
    %cst_40 = arith.constant dense<0.000000e+00> : vector<8x5xf32>
    %50 = tpu.matmul %48, %49, %cst_40 {dimension_numbers = #tpu.dot_dimension_numbers<[1], [0], [0], [1], [0, 0, 1, 1], [], []>} : vector<8x32xf32>, vector<32x5xf32>, vector<8x5xf32> -> vector<8x5xf32>
    %c0_41 = arith.constant 0 : index
    %c0_42 = arith.constant 0 : index
    %51 = vector.load %arg12[%c0_41, %c0_42] : memref<1x5xf32, #tpu.memory_space<vmem>>, vector<1x5xf32>
    %52 = vector.broadcast %51 : vector<1x5xf32> to vector<8x5xf32>
    %53 = arith.addf %50, %52 : vector<8x5xf32>
    %c0_43 = arith.constant 0 : index
    %c0_44 = arith.constant 0 : index
    %54 = vector.load %arg13[%c0_43, %c0_44] : memref<8x5xf32, #tpu.memory_space<vmem>>, vector<8x5xf32>
    tpu.vector_store %arg13[%c0_43, %c0_44], %53 {strides = array<i32>} : memref<8x5xf32, #tpu.memory_space<vmem>>, vector<8x5xf32>,
    return
  }
}

</mosaic_0001>

<bundles_post_ra>
// kernel: tpu_custom_call.1
= control target key start
LH: loop header
LB: loop body
LE: loop exit
PB: predicated region body
PF: predicated region fallthrough
CT: control target
= control target key end

     0   :  { %19 = vsyncpa [#allocation7], 0  ;;  %vm68_vm0 = vcmask 146432   ;;  %vm105_vm1 = vcmask 1041408   ;;  %vm384_vm2 = vcmask 654336   ;;  %vm386_vm3 = vcmask 261120   ;;  %s1428_s0 = inlined_call_operand.vmem [shape: f32[96,18], index: 0, kind: input, shape index: {}]   ;;  %s1429_s1 = inlined_call_operand.vmem [shape: f32[18,16], index: 1, kind: input, shape index: {}]   ;;  %s1430_s2 = inlined_call_operand.vmem [shape: f32[1,16], index: 2, kind: input, shape index: {}]   ;;  %s1431_s3 = inlined_call_operand.vmem [shape: f32[1,16], index: 3, kind: input, shape index: {}]   ;;  %s1432_s4 = inlined_call_operand.vmem [shape: f32[1,16], index: 4, kind: input, shape index: {}]   ;;  %s1433_s5 = inlined_call_operand.vmem [shape: s32[8,1], index: 5, kind: input, shape index: {}]   ;;  %s1434_s6 = inlined_call_operand.<no memory space> [shape: s32[1], index: 6, kind: input, shape index: {}]   ;;  %s1435_s7 = inlined_call_operand.vmem [shape: f32[48,128], index: 7, kind: input, shape index: {}]   ;;  %s1436_s8 = inlined_call_operand.vmem [shape: f32[1,128], index: 8, kind: input, shape index: {}]   ;;  %s1437_s9 = inlined_call_operand.vmem [shape: f32[64,128], index: 9, kind: input, shape index: {}]   ;;  %s1438_s10 = inlined_call_operand.vmem [shape: f32[1,128], index: 10, kind: input, shape index: {}]   ;;  %s1439_s11 = inlined_call_operand.vmem [shape: f32[32,5], index: 11, kind: input, shape index: {}]   ;;  %s1440_s12 = inlined_call_operand.vmem [shape: f32[1,5], index: 12, kind: input, shape index: {}]   ;;  %s1441_s13 = inlined_call_operand.hbm [shape: f32[8,5], index: 13, kind: output, shape index: {}]  }
   0x1   :  { %v58_v0 = vld [vmem:[%s1429_s1] sm:$0xff]  ;;  %v59_v1 = vld [vmem:[%s1429_s1 + $0x8] sm:$0xff]  ;;  %v60_v4 = vld [vmem:[%s1429_s1 + $0x10] sm:$0x3]  ;;  %v1029_v16 = vmov 0.0   ;;  %vm246_vm4 = vcmask 130048  }
   0x2   :  { %v919_v2 = vpack.c.bf16 %v59_v1, %v58_v0  ;;  %v46_v3 = vld [vmem:[%s1428_s0] sm:$0xff]  ;;  %v52_v5 = vld [vmem:[%s1428_s0 + $0x30] sm:$0xff]  ;;  %v47_v6 = vld [vmem:[%s1428_s0 + $0x8] sm:$0xff]  ;;  %385 = vst.msk [vmem:[#allocation3] sm:$0xff] %vm384_vm2, %v1029_v16  ;;  %p806_p0 = scmp.le.s32.totalorder %s1434_s6, 0 }
   0x3   :  { %856 = vmatprep.mubr.msk.f32.mxu0 %vm68_vm0, %v46_v3  ;;  %865 = vmatprep.mubr.msk.f32.mxu1 %vm68_vm0, %v52_v5  ;;  %v53_v7 = vld [vmem:[%s1428_s0 + $0x38] sm:$0xff]  ;;  %v48_v8 = vld [vmem:[%s1428_s0 + $0x10] sm:$0xff]  ;;  %v54_v9 = vld [vmem:[%s1428_s0 + $0x40] sm:$0xff]  ;;  %387 = vst.msk [vmem:[#allocation4] sm:$0xff] %vm386_vm3, %v1029_v16  ;;  %s1302_s26 = smov (!%p806_p0), 0  }
   0x4   :  { %920 = vmatprep.subr.bf16.mxu0 %v919_v2  ;;  %950 = vmatprep.subr.bf16.mxu1 %v919_v2  ;;  %v49_v10 = vld [vmem:[%s1428_s0 + $0x18] sm:$0xff]  ;;  %v55_v11 = vld [vmem:[%s1428_s0 + $0x48] sm:$0xff]  ;;  %v50_v12 = vld [vmem:[%s1428_s0 + $0x20] sm:$0xff]  ;;  %388 = vst.msk [vmem:[#allocation4 + $0x8] sm:$0xff] %vm386_vm3, %v1029_v16 }
   0x5   :  { %922 = vmatpush3.bf16.msra.mxu0 %v919_v2  ;;  %952 = vmatpush3.bf16.msra.mxu1 %v919_v2  ;;  %v56_v13 = vld [vmem:[%s1428_s0 + $0x50] sm:$0xff]  ;;  %v51_v14 = vld [vmem:[%s1428_s0 + $0x28] sm:$0xff]  ;;  %v57_v15 = vld [vmem:[%s1428_s0 + $0x58] sm:$0xff] }
   0x6   :  { %854 = vmatprep.subr.msk.mxu0 %vm105_vm1, %v60_v4  ;;  %951 = vmatprep.subr.msk.mxu1 %vm105_vm1, %v60_v4  ;;  %v1179_v17 = vld [vmem:[%s1433_s5] sm:$0xff] }
   0x7   :  { %v1184_v18 = vld [vmem:[%s1436_s8] ss:$0 sm:$0xff] }
   0x8   :  { %v1189_v19 = vld [vmem:[%s1438_s10] ss:$0 sm:$0xff] }
   0x9   :  { %855 = vmatpush3.msk.msra.mxu0 %vm105_vm1, %v60_v4  ;;  %953 = vmatpush3.msk.msra.mxu1 %vm105_vm1, %v60_v4  ;;  %v789_v20 = vld [vmem:[%s1430_s2] ss:$0 sm:$0xff] }
   0xa   :  { %857 = vmatmul.mubr.msk.f32.vlgmr.msra.gmra.mrb[0].mxu0 %vm68_vm0, %v47_v6  ;;  %866 = vmatmul.mubr.msk.f32.vlgmr.msra.gmra.mrb[0].mxu1 %vm68_vm0, %v53_v7 }
   0xb   :  { %859 = vmatprep.mubr.msk.f32.mxu0 %vm68_vm0, %v48_v8  ;;  %868 = vmatprep.mubr.msk.f32.mxu1 %vm68_vm0, %v54_v9 }
   0xe   :  { %860 = vmatmul.mubr.msk.f32.gmra.mrb[2].mxu0 %vm68_vm0, %v49_v10  ;;  %869 = vmatmul.mubr.msk.f32.gmra.mrb[2].mxu1 %vm68_vm0, %v55_v11 }
   0xf   :  { %862 = vmatprep.mubr.msk.f32.mxu0 %vm68_vm0, %v50_v12  ;;  %871 = vmatprep.mubr.msk.f32.mxu1 %vm68_vm0, %v56_v13 }
  0x12   :  { %863 = vmatmul.mubr.msk.f32.gmra.mrb[4].mxu0 %vm68_vm0, %v51_v14  ;;  %872 = vmatmul.mubr.msk.f32.gmra.mrb[4].mxu1 %vm68_vm0, %v57_v15 }
  0xdd   :  { %v858_v21 = vpop.f32.mrb[0].mxu0  ;;  %v867_v22 = vpop.f32.mrb[0].mxu1 }
  0xde   :  { %v1194_v23 = vadd.f32 %v858_v21, %v789_v20  ;;  %v175_v24 = vpop.f32.mrb[1].mxu0  ;;  %v205_v25 = vpop.f32.mrb[1].mxu1  ;;  %v211_v49 = vadd.f32 %v867_v22, %v789_v20 }
  0xdf   :  { %v176_v26 = vadd.f32 %v789_v20, %v175_v24  ;;  %v206_v38 = vadd.f32 %v789_v20, %v205_v25 }
  0xe0   :  { %v235_v27 = vmax.f32 %v1194_v23, 0.0  ;;  %v241_v58 = vmax.f32 %v211_v49, 0.0 }
  0xe1   :  { %v234_v28 = vmax.f32 %v176_v26, 0.0  ;;  %v861_v29 = vpop.f32.mrb[2].mxu0  ;;  %v870_v30 = vpop.f32.mrb[2].mxu1  ;;  %v240_v50 = vmax.f32 %v206_v38, 0.0 }
  0xe2   :  { %v248_v31 = vsel %vm246_vm4, %v235_v27, 0.0  ;;  %v191_v32 = vadd.f32 %v861_v29, %v789_v20  ;;  %v185_v33 = vpop.f32.mrb[3].mxu0  ;;  %v215_v34 = vpop.f32.mrb[3].mxu1  ;;  %v221_v59 = vadd.f32 %v870_v30, %v789_v20  ;;  %v260_v1 = vsel %vm246_vm4, %v241_v58, 0.0 }
  0xe3   :  { %v247_v35 = vsel %vm246_vm4, %v234_v28, 0.0  ;;  %v186_v36 = vadd.f32 %v789_v20, %v185_v33  ;;  %v216_v54 = vadd.f32 %v789_v20, %v215_v34  ;;  %v258_v61 = vsel %vm246_vm4, %v240_v50, 0.0 }
  0xe4   :  { %v249_v37 = vadd.f32 %v248_v31, %v247_v35  ;;  %v237_v39 = vmax.f32 %v191_v32, 0.0  ;;  %v243_v3 = vmax.f32 %v221_v59, 0.0 }
  0xe5   :  { %v236_v40 = vmax.f32 %v186_v36, 0.0  ;;  %v864_v41 = vpop.f32.mrb[4].mxu0  ;;  %v873_v42 = vpop.f32.mrb[4].mxu1  ;;  %v242_v62 = vmax.f32 %v216_v54, 0.0 }
  0xe6   :  { %v201_v43 = vadd.f32 %v864_v41, %v789_v20  ;;  %v195_v44 = vpop.f32.mrb[5].mxu0  ;;  %v225_v45 = vpop.f32.mrb[5].mxu1  ;;  %v252_v51 = vsel %vm246_vm4, %v237_v39, 0.0  ;;  %v231_v5 = vadd.f32 %v873_v42, %v789_v20  ;;  %v264_v9 = vsel %vm246_vm4, %v243_v3, 0.0 }
  0xe7   :  { %v250_v46 = vsel %vm246_vm4, %v236_v40, 0.0  ;;  %v196_v47 = vadd.f32 %v789_v20, %v195_v44  ;;  %v226_v63 = vadd.f32 %v789_v20, %v225_v45  ;;  %v262_v4 = vsel %vm246_vm4, %v242_v62, 0.0 }
  0xe8   :  { %v251_v48 = vadd.f32 %v250_v46, %v249_v37  ;;  %v239_v52 = vmax.f32 %v201_v43, 0.0  ;;  %v245_v10 = vmax.f32 %v231_v5, 0.0 }
  0xe9   :  { %v238_v53 = vmax.f32 %v196_v47, 0.0  ;;  %v244_v6 = vmax.f32 %v226_v63, 0.0 }
  0xea   :  { %v253_v55 = vadd.f32 %v252_v51, %v251_v48  ;;  %v256_v60 = vsel %vm246_vm4, %v239_v52, 0.0  ;;  %v268_v14 = vsel %vm246_vm4, %v245_v10, 0.0 }
  0xeb   :  { %v254_v56 = vsel %vm246_vm4, %v238_v53, 0.0  ;;  %v266_v11 = vsel %vm246_vm4, %v244_v6, 0.0 }
  0xec   :  { %v255_v57 = vadd.f32 %v254_v56, %v253_v55 }
  0xee   :  { %v257_v0 = vadd.f32 %v256_v60, %v255_v57 }
  0xf0   :  { %v259_v2 = vadd.f32 %v258_v61, %v257_v0 }
  0xf2   :  { %v261_v7 = vadd.f32 %v260_v1, %v259_v2 }
  0xf4   :  { %v263_v8 = vadd.f32 %v262_v4, %v261_v7 }
  0xf6   :  { %v265_v12 = vadd.f32 %v264_v9, %v263_v8 }
  0xf8   :  { %v267_v13 = vadd.f32 %v266_v11, %v265_v12 }
  0xfa   :  { %v269_v15 = vadd.f32 %v268_v14, %v267_v13 }
  0xfc   :  { %v270_v21 = vrot.slane %v269_v15, 4 }
  0xfe   :  { %v271_v22 = vadd.f32 %v270_v21, %v269_v15 }
 0x100   :  { %v272_v23 = vrot.slane %v271_v22, 2 }
 0x102   :  { %v273_v24 = vadd.f32 %v272_v23, %v271_v22  ;;  %v336_v23 = vlaneseq }
 0x104   :  { %v274_v25 = vrot.slane %v273_v24, 1 }
 0x106   :  { %v275_v26 = vadd.f32 %v274_v25, %v273_v24  ;;  %v337_v24 = vshrl.u32 %v336_v23, 7  ;;  %v331_v25 = vld [vmem:[%s1431_s3] sm:$0x1] }
 0x108   :  { %v276_v20 = vmul.f32 0.010416667, %v275_v26  ;;  %v338_v26 = vsub.s32 0, %v337_v24 }
 0x10a   :  { %v1209_v29 = vsub.f32 %v234_v28, %v276_v20  ;;  %v1211_v30 = vsub.f32 %v235_v27, %v276_v20  ;;  %v1213_v31 = vsub.f32 %v236_v40, %v276_v20  ;;  %v1215_v32 = vsub.f32 %v237_v39, %v276_v20 }
 0x10b   :  { %v1217_v33 = vsub.f32 %v238_v53, %v276_v20  ;;  %v1219_v34 = vsub.f32 %v239_v52, %v276_v20  ;;  %v1221_v35 = vsub.f32 %v240_v50, %v276_v20  ;;  %v1223_v36 = vsub.f32 %v241_v58, %v276_v20 }
 0x10c   :  { %v1225_v37 = vsub.f32 %v242_v62, %v276_v20  ;;  %v1227_v38 = vsub.f32 %v243_v3, %v276_v20  ;;  %v1229_v28 = vsub.f32 %v244_v6, %v276_v20  ;;  %v1231_v27 = vsub.f32 %v245_v10, %v276_v20 }
 0x10d   :  { %v289_v39 = vmul.f32 %v1209_v29, %v1209_v29  ;;  %v290_v40 = vmul.f32 %v1211_v30, %v1211_v30  ;;  %v291_v41 = vmul.f32 %v1213_v31, %v1213_v31  ;;  %v292_v42 = vmul.f32 %v1215_v32, %v1215_v32 }
 0x10e   :  { %v293_v46 = vmul.f32 %v1217_v33, %v1217_v33  ;;  %v294_v49 = vmul.f32 %v1219_v34, %v1219_v34  ;;  %v295_v52 = vmul.f32 %v1221_v35, %v1221_v35  ;;  %v296_v55 = vmul.f32 %v1223_v36, %v1223_v36 }
 0x10f   :  { %v301_v43 = vsel %vm246_vm4, %v289_v39, 0.0  ;;  %v302_v44 = vsel %vm246_vm4, %v290_v40, 0.0  ;;  %v304_v47 = vsel %vm246_vm4, %v291_v41, 0.0  ;;  %v306_v50 = vsel %vm246_vm4, %v292_v42, 0.0 }
 0x110   :  { %v303_v45 = vadd.f32 %v302_v44, %v301_v43  ;;  %v308_v53 = vsel %vm246_vm4, %v293_v46, 0.0  ;;  %v310_v56 = vsel %vm246_vm4, %v294_v49, 0.0  ;;  %v297_v58 = vmul.f32 %v1225_v37, %v1225_v37 }
 0x111   :  { %v312_v59 = vsel %vm246_vm4, %v295_v52, 0.0  ;;  %v298_v61 = vmul.f32 %v1227_v38, %v1227_v38  ;;  %v314_v62 = vsel %vm246_vm4, %v296_v55, 0.0  ;;  %v299_v0 = vmul.f32 %v1229_v28, %v1229_v28 }
 0x112   :  { %v305_v48 = vadd.f32 %v304_v47, %v303_v45  ;;  %v316_v1 = vsel %vm246_vm4, %v297_v58, 0.0  ;;  %v300_v3 = vmul.f32 %v1231_v27, %v1231_v27  ;;  %v803_v45 = vld [vmem:[%s1432_s4] ss:$0 sm:$0xff] }
 0x113   :  { %v318_v4 = vsel %vm246_vm4, %v298_v61, 0.0  ;;  %v320_v6 = vsel %vm246_vm4, %v299_v0, 0.0 }
 0x114   :  { %v307_v51 = vadd.f32 %v306_v50, %v305_v48  ;;  %v322_v8 = vsel %vm246_vm4, %v300_v3, 0.0 }
 0x116   :  { %v309_v54 = vadd.f32 %v308_v53, %v307_v51 }
 0x118   :  { %v311_v57 = vadd.f32 %v310_v56, %v309_v54 }
 0x11a   :  { %v313_v60 = vadd.f32 %v312_v59, %v311_v57 }
 0x11c   :  { %v315_v63 = vadd.f32 %v314_v62, %v313_v60 }
 0x11e   :  { %v317_v2 = vadd.f32 %v316_v1, %v315_v63 }
 0x120   :  { %v319_v5 = vadd.f32 %v318_v4, %v317_v2 }
 0x122   :  { %v321_v7 = vadd.f32 %v320_v6, %v319_v5 }
 0x124   :  { %v323_v9 = vadd.f32 %v322_v8, %v321_v7 }
 0x126   :  { %v324_v10 = vrot.slane %v323_v9, 4 }
 0x128   :  { %v325_v11 = vadd.f32 %v324_v10, %v323_v9 }
 0x12a   :  { %v326_v12 = vrot.slane %v325_v11, 2 }
 0x12c   :  { %v327_v13 = vadd.f32 %v326_v12, %v325_v11 }
 0x12e   :  { %v328_v14 = vrot.slane %v327_v13, 1 }
 0x130   :  { %v329_v15 = vadd.f32 %v328_v14, %v327_v13 }
 0x132   :  { %v330_v21 = vmul.f32 0.010416667, %v329_v15 }
 0x134   :  { %v332_v22 = vadd.f32 1e-05, %v330_v21 }
 0x136   :  { %977 = vrsqrt.f32 %v332_v22 }
 0x140   :  { %v978_v20 = vpop.eup %977 }
 0x141   :  { %v334_v39 = vmul.f32 %v978_v20, %v331_v25 }
 0x143   :  { %v339_v40 = vrot.slane %v334_v39, %v338_v26 }
 0x145   :  { %v341_v41 = vmul.f32 %v339_v40, %v1209_v29  ;;  %v342_v42 = vmul.f32 %v339_v40, %v1211_v30  ;;  %v343_v43 = vmul.f32 %v339_v40, %v1213_v31  ;;  %v344_v44 = vmul.f32 %v339_v40, %v1215_v32 }
 0x146   :  { %v345_v46 = vmul.f32 %v339_v40, %v1217_v33  ;;  %v346_v47 = vmul.f32 %v339_v40, %v1219_v34  ;;  %v347_v48 = vmul.f32 %v339_v40, %v1221_v35  ;;  %v348_v49 = vmul.f32 %v339_v40, %v1223_v36 }
 0x147   :  { %v349_v29 = vmul.f32 %v339_v40, %v1225_v37  ;;  %v350_v30 = vmul.f32 %v339_v40, %v1227_v38  ;;  %v351_v31 = vmul.f32 %v339_v40, %v1229_v28  ;;  %v352_v32 = vmul.f32 %v339_v40, %v1231_v27 }
 0x148   :  { %v360_v50 = vadd.f32 %v803_v45, %v341_v41  ;;  %v361_v51 = vadd.f32 %v803_v45, %v342_v42  ;;  %v362_v52 = vadd.f32 %v803_v45, %v343_v43  ;;  %v363_v53 = vadd.f32 %v803_v45, %v344_v44 }
 0x149   :  { %v364_v54 = vadd.f32 %v803_v45, %v345_v46  ;;  %v365_v33 = vadd.f32 %v803_v45, %v346_v47  ;;  %v366_v55 = vadd.f32 %v803_v45, %v347_v48  ;;  %v367_v34 = vadd.f32 %v803_v45, %v348_v49 }
 0x14a   :  { %v368_v56 = vadd.f32 %v803_v45, %v349_v29  ;;  %v369_v35 = vadd.f32 %v803_v45, %v350_v30  ;;  %v370_v57 = vadd.f32 %v803_v45, %v351_v31  ;;  %v371_v36 = vadd.f32 %v803_v45, %v352_v32  ;;  %372 = vst.msk [vmem:[#allocation2] sm:$0xff] %vm246_vm4, %v360_v50  ;;  %786 = sbr.rel (%p806_p0) target bundleno = 1882 (0x75a), region = 75 }
 0x14b   :  { %373 = vst.msk [vmem:[#allocation2 + $0x8] sm:$0xff] %vm246_vm4, %v361_v51  ;;  %374 = vst.msk [vmem:[#allocation2 + $0x10] sm:$0xff] %vm246_vm4, %v362_v52 }
 0x14c   :  { %375 = vst.msk [vmem:[#allocation2 + $0x18] sm:$0xff] %vm246_vm4, %v363_v53  ;;  %376 = vst.msk [vmem:[#allocation2 + $0x20] sm:$0xff] %vm246_vm4, %v364_v54 }
 0x14d   :  { %377 = vst.msk [vmem:[#allocation2 + $0x28] sm:$0xff] %vm246_vm4, %v365_v33  ;;  %378 = vst.msk [vmem:[#allocation2 + $0x30] sm:$0xff] %vm246_vm4, %v366_v55 }
 0x14e   :  { %379 = vst.msk [vmem:[#allocation2 + $0x38] sm:$0xff] %vm246_vm4, %v367_v34  ;;  %380 = vst.msk [vmem:[#allocation2 + $0x40] sm:$0xff] %vm246_vm4, %v368_v56 }
 0x14f   :  { %381 = vst.msk [vmem:[#allocation2 + $0x48] sm:$0xff] %vm246_vm4, %v369_v35  ;;  %382 = vst.msk [vmem:[#allocation2 + $0x50] sm:$0xff] %vm246_vm4, %v370_v57 }
 0x150   :  { %383 = vst.msk [vmem:[#allocation2 + $0x58] sm:$0xff] %vm246_vm4, %v371_v36 }
 0x151 LB: > { %v424_v37 = vld [vmem:[%s1435_s7] sm:$0xff]  ;;  %v425_v38 = vld [vmem:[%s1435_s7 + $0x8] sm:$0xff]  ;;  %v426_v28 = vld [vmem:[%s1435_s7 + $0x10] sm:$0xff]  ;;  %v1030_v27 = vmov 0.0|0.0   ;;  %vm1031_vm5 = vmmov 0   ;;  %v1032_v60 = vmov 0.0   ;;  %v415_v12 = vstv %s1027_s26  ;;  %s1027_s26 = sphi %s1302_s26, %s408_s26  }
 0x152   : > { %923 = vmatprep.subr.bf16.mxu0 %v1030_v27  ;;  %v924_v58 = vpack.c.bf16 %v425_v38, %v424_v37  ;;  %v427_v59 = vld [vmem:[%s1435_s7 + $0x18] sm:$0xff]  ;;  %886 = vmatprep.mubr.msk.f32.mxu0 %vm1031_vm5, %v1032_v60  ;;  %s807_s18 = sshll.u32 %s1027_s26, 3  ;;  %v428_v62 = vld [vmem:[%s1435_s7 + $0x20] sm:$0xff]  ;;  %v429_v63 = vld [vmem:[%s1435_s7 + $0x28] sm:$0xff]  ;;  %vm430_vm6 = vcmask 392192   ;;  %v1033_v6 = vmov 0   ;;  %vm416_vm7 = vcmp.lt.s32.totalorder %v415_v12, %v1179_v17 }
 0x153   : > { %932 = vmatprep.subr.bf16.mxu1 %v1030_v27  ;;  %905 = vmatprep.mubr.msk.f32.mxu1 %vm1031_vm5, %v1032_v60  ;;  %v927_v61 = vpack.c.bf16 %v427_v59, %v426_v28  ;;  %s412_s21 = scalar_lea.vmem [#allocation2], %s807_s18  ;;  %v930_v1 = vpack.c.bf16 %v429_v63, %v428_v62  ;;  %s1034_s22 = smov 32   ;;  %v423_v8 = vld [vmem:[#allocation4] sm:$0xff]  ;;  %v417_v21 = vsel %vm416_vm7, 1, %v1033_v6  ;;  %v551_v39 = vld [vmem:[%s1437_s9] sm:$0xff]  ;;  %v553_v41 = vld [vmem:[%s1437_s9 + $0x10] sm:$0xff] }
 0x154   : > { %925 = vmatpush3.bf16.msra.mxu0 %v924_v58  ;;  %979 = vset.pattern.permute.xlu1 %v1033_v6  ;;  %s1035_s23 = smov 48   ;;  %v552_v40 = vld [vmem:[%s1437_s9 + $0x8] sm:$0xff]  ;;  %v554_v45 = vld [vmem:[%s1437_s9 + $0x18] sm:$0xff]  ;;  %v555_v49 = vld [vmem:[%s1437_s9 + $0x20] sm:$0xff]  ;;  %s1036_s14 = smov 80   ;;  %vm546_vm9 = vcmask 392320  }
 0x155   : > { %926 = vmatprep.subr.bf16.mxu0 %v1030_v27  ;;  %980 = vset.pattern.permute.xlu0 %v1033_v6  ;;  %v933_v44 = vpack.c.bf16 %v552_v40, %v551_v39  ;;  %v936_v47 = vpack.c.bf16 %v554_v45, %v553_v41  ;;  %v556_v29 = vld [vmem:[%s1437_s9 + $0x28] sm:$0xff]  ;;  %v557_v31 = vld [vmem:[%s1437_s9 + $0x30] sm:$0xff]  ;;  %v558_v32 = vld [vmem:[%s1437_s9 + $0x38] sm:$0xff]  ;;  %s1037_s19 = smov 112   ;;  %vm562_vm10 = vcmask 523264   ;;  %s1038_s1 = smov 16  }
 0x156   : > { %v939_v30 = vpack.c.bf16 %v556_v29, %v555_v49  ;;  %v942_v50 = vpack.c.bf16 %v558_v32, %v557_v31  ;;  %v550_v53 = vld [vmem:[#allocation4 + $0x8] sm:$0xff]  ;;  %s1039_s20 = smov 96   ;;  %vm677_vm11 = vcmask 654720   ;;  %s408_s26 = sadd.s32 1, %s1027_s26  }
 0x157   : > { %v413_v0 = vld [vmem:[%s412_s21] sm:$0xff]  ;;  %934 = vmatpush3.bf16.msra.mxu1 %v933_v44  ;;  %p407_p1 = scmp.ge.s32.totalorder %s408_s26, %s1434_s6 }
 0x158   : > { %414 = vst.msk [vmem:[#allocation3] sm:$0xff] %vm246_vm4, %v413_v0  ;;  %928 = vmatpush3.bf16.msra.mxu0 %v927_v61  ;;  %935 = vmatprep.subr.bf16.mxu1 %v1030_v27 }
 0x159   : > { %929 = vmatprep.subr.bf16.mxu0 %v1030_v27 }
 0x15b   : > { %937 = vmatpush3.bf16.msra.mxu1 %v936_v47 }
 0x15c   : > { %931 = vmatpush3.bf16.msra.mxu0 %v930_v1  ;;  %938 = vmatprep.subr.bf16.mxu1 %v1030_v27 }
 0x15f   : > { %v422_v2 = vld [vmem:[#allocation3] sm:$0xff]  ;;  %940 = vmatpush3.bf16.msra.mxu1 %v939_v30 }
 0x160   : > { %887 = vmatmul.mubr.msk.f32.vlgmr.msra.gmra.mrb[0].mxu0 %vm430_vm6, %v422_v2  ;;  %941 = vmatprep.subr.bf16.mxu1 %v1030_v27 }
 0x163   : > { %943 = vmatpush3.bf16.msra.mxu1 %v942_v50 }
 0x233   : > { %v500_v3 = vpop.f32.mrb[0].mxu0 }
 0x234   : > { %v501_v4 = vadd.f32 %v1184_v18, %v500_v3  ;;  %v888_v5 = vpop.f32.mrb[1].mxu0 }
 0x236   : > { %981 = vtanh.f32 %v501_v4  ;;  %v809_v9 = vmul.f32 -1.442695, %v501_v4 }
 0x238   : > { %983 = vpow2.f32 %v809_v9 }
 0x240   : > { %v982_v7 = vpop.eup %981 }
 0x241   : > { %517 = vrot.lane.b32.xlu0 %v982_v7, %s1034_s22 }
 0x242   : > { %v984_v10 = vpop.eup %983 }
 0x243   : > { %v507_v11 = vadd.f32 1.0, %v984_v10 }
 0x245   : > { %512 = vrot.lane.b32.xlu0 %v423_v8, %s1034_s22  ;;  %985 = vrcp.f32 %v507_v11 }
 0x24f   : > { %v986_v13 = vpop.eup %985 }
 0x2b3   : > { %v518_v14 = vpop.permute.xlu0 %517 }
 0x2b4   : > { %v520_v15 = vmul.f32 %v986_v13, %v518_v14 }
 0x2b6   : > { %522 = vrot.lane.b32.xlu1 %v520_v15, %s1034_s22 }
 0x2b7   : > { %v1337_v22 = vpop.permute.xlu0 %512 }
 0x2b8   : > { %v515_v23 = vmul.f32 %v986_v13, %v1337_v22 }
 0x2ba   : > { %419 = vperm.xlu1 %979, %v417_v21  }
 0x2be   : > { %532 = vrot.lane.b32.xlu1 %v422_v2, %s1035_s23 }
 0x328   : > { %v523_v24 = vpop.permute.xlu1 %522 }
 0x329   : > { %v1340_v25 = vadd.f32 %v523_v24, %v515_v23 }
 0x32b   : > { %987 = vtanh.f32 %v1340_v25 }
 0x335   : > { %v988_v26 = vpop.eup %987 }
 0x336   : > { %528 = vrot.lane.b32.xlu0 %v988_v26, %s1034_s22 }
 0x339   : > { %v1344_v20 = vpop.permute.xlu1 %419 }
 0x33a   : > { %vm421_vm8 = vcmp.eq.s32.totalorder %v1344_v20, 1 }
 0x33b   : > { %v536_v63 = vsel %vm421_vm8, %v1340_v25, %v1337_v22 }
 0x33d   : > { %v533_v43 = vpop.permute.xlu1 %532 }
 0x3a8   : > { %v529_v42 = vpop.permute.xlu0 %528 }
 0x3a9   : > { %v531_v46 = vmul.f32 %v986_v13, %v529_v42 }
 0x3ab   : > { %v535_v48 = vsel %vm421_vm8, %v531_v46, %v533_v43 }
 0x3ac   : > { %543 = vrot.lane.b32.xlu0 %v535_v48, %s1036_s14 }
 0x41e   : > { %v544_v51 = vpop.permute.xlu0 %543 }
 0x41f   : > { %547 = vst.msk [vmem:[#allocation3] sm:$0xff] %vm546_vm9, %v544_v51 }
 0x426   : > { %v548_v52 = vld [vmem:[#allocation3] sm:$0xff] }
 0x427   : > { %560 = vrot.lane.b32.xlu1 %v548_v52, %s1037_s19 }
 0x42b   : > { %643 = vrot.lane.b32.xlu1 %v550_v53, %s1034_s22 }
 0x499   : > { %v561_v54 = vpop.permute.xlu1 %560 }
 0x49a   : > { %906 = vmatmul.mubr.msk.f32.vlgmr.msra.gmra.mrb[0].mxu1 %vm562_vm10, %v561_v54 }
 0x49d   : > { %v644_v27 = vpop.permute.xlu1 %643 }
 0x56d   : > { %v631_v33 = vpop.f32.mrb[0].mxu1 }
 0x56e   : > { %v632_v55 = vadd.f32 %v1189_v19, %v631_v33  ;;  %v907_v34 = vpop.f32.mrb[1].mxu1 }
 0x570   : > { %989 = vtanh.f32 %v632_v55  ;;  %v811_v35 = vmul.f32 -1.442695, %v632_v55 }
 0x572   : > { %991 = vpow2.f32 %v811_v35 }
 0x57a   : > { %v990_v56 = vpop.eup %989 }
 0x57b   : > { %648 = vrot.lane.b32.xlu0 %v990_v56, %s1034_s22 }
 0x57c   : > { %v992_v57 = vpop.eup %991 }
 0x57d   : > { %v638_v36 = vadd.f32 1.0, %v992_v57 }
 0x57f   : > { %993 = vrcp.f32 %v638_v36 }
 0x589   : > { %v994_v37 = vpop.eup %993 }
 0x58a   : > { %v646_v58 = vmul.f32 %v994_v37, %v644_v27 }
 0x5ed   : > { %v649_v38 = vpop.permute.xlu0 %648 }
 0x5ee   : > { %v651_v28 = vmul.f32 %v994_v37, %v649_v38 }
 0x5f0   : > { %653 = vrot.lane.b32.xlu0 %v651_v28, %s1034_s22 }
 0x5f4   : > { %663 = vrot.lane.b32.xlu0 %v548_v52, %s1038_s1 }
 0x662   : > { %v654_v59 = vpop.permute.xlu0 %653 }
 0x663   : > { %v656_v60 = vadd.f32 %v654_v59, %v646_v58 }
 0x665   : > { %995 = vtanh.f32 %v656_v60  ;;  %v667_v61 = vsel %vm421_vm8, %v656_v60, %v644_v27 }
 0x666   : > { %669 = vrot.lane.b32.xlu0 %v667_v61, %s1039_s20  ;;  %v664_v0 = vpop.permute.xlu0 %663 }
 0x66f   : > { %v996_v62 = vpop.eup %995 }
 0x670   : > { %659 = vrot.lane.b32.xlu1 %v996_v62, %s1034_s22 }
 0x674   : > { %538 = vrot.lane.b32.xlu1 %v536_v63, %s1039_s20 }
 0x6d8   : > { %v670_v1 = vpop.permute.xlu0 %669 }
 0x6d9   : > { %672 = vst.msk [vmem:[#allocation4 + $0x8] sm:$0xff] %vm386_vm3, %v670_v1 }
 0x6e2   : > { %v660_v2 = vpop.permute.xlu1 %659 }
 0x6e3   : > { %v662_v3 = vmul.f32 %v994_v37, %v660_v2 }
 0x6e5   : > { %v666_v4 = vsel %vm421_vm8, %v662_v3, %v664_v0 }
 0x6e6   : > { %674 = vrot.lane.b32.xlu1 %v666_v4, %s1037_s19  ;;  %v539_v5 = vpop.permute.xlu1 %538 }
 0x6e7   : > { %541 = vst.msk [vmem:[#allocation4] sm:$0xff] %vm386_vm3, %v539_v5 }
 0x753   :  { %410 = sbr.rel (!%p407_p1) target bundleno = 337 (0x151), region = 81 }
 0x758   : > { %v675_v6 = vpop.permute.xlu1 %674 }
 0x759   : > { %678 = vst.msk [vmem:[#allocation3] sm:$0xff] %vm677_vm11, %v675_v6 }
 0x75a PF:  { %v680_v8 = vld [vmem:[%s1439_s11] sm:$0xff]  ;;  %v681_v9 = vld [vmem:[%s1439_s11 + $0x8] sm:$0xff]  ;;  %s1040_s2 = smov 80   ;;  %v1041_v10 = vmov 0.0|0.0   ;;  %v682_v12 = vld [vmem:[%s1439_s11 + $0x10] sm:$0xff]  ;;  %vm1042_vm12 = vmmov 0  }
 0x75b   :  { %944 = vmatprep.subr.bf16.mxu0 %v1041_v10  ;;  %v945_v11 = vpack.c.bf16 %v681_v9, %v680_v8  ;;  %v683_v17 = vld [vmem:[%s1439_s11 + $0x18] sm:$0xff]  ;;  %916 = vmatprep.mubr.msk.f32.mxu0 %vm1042_vm12, %v1029_v16  ;;  %v812_v13 = vld [vmem:[%s1440_s12] ss:$0 sm:$0xff]  ;;  %s1043_s10 = smov [#allocation6]   ;;  %vm766_vm13 = vcmask 39936  }
 0x75c   :  { %v948_v18 = vpack.c.bf16 %v683_v17, %v682_v12  ;;  %s774_s3 = sshll.u32 %s1043_s10, 4  ;;  %s775_s3 = int_to_ptr.vmem [resolvable:$true] %s774_s3 }
 0x75d   :  { %946 = vmatpush3.bf16.msra.mxu0 %v945_v11  ;;  %s997_s11 = scalar_lea.vmem %s775_s3, 128  ;;  %p1002_p3 = scmp.lt.s32.totalorder %s775_s3, %s775_s3 }
 0x75e   :  { %947 = vmatprep.subr.bf16.mxu0 %v1041_v10  ;;  %p998_p2 = scmp.ne.s32.totalorder %s775_s3, %s997_s11  ;;  %p1003_p4 = scmp.lt.s32.totalorder %s997_s11, %s997_s11 }
 0x760   :  { %v679_v7 = vld [vmem:[#allocation3] sm:$0xff]  ;;  %p1004_p5 = por %p1003_p4, %p1002_p3 }
 0x761   :  { %692 = vrot.lane.b32.xlu0 %v679_v7, %s1040_s2  ;;  %949 = vmatpush3.bf16.msra.mxu0 %v948_v18 }
 0x762   :  { %p1005_p6 = pnand %p1004_p5, %p998_p2 }
 0x7d3   :  { %v693_v19 = vpop.permute.xlu0 %692 }
 0x7d4   :  { %917 = vmatmul.mubr.msk.f32.vlgmr.msra.gmra.mrb[0].mxu0 %vm386_vm3, %v693_v19 }
 0x8a7   :  { %v762_v14 = vpop.f32.mrb[0].mxu0 }
 0x8a8   :  { %v763_v15 = vadd.f32 %v812_v13, %v762_v14  ;;  %v918_v21 = vpop.f32.mrb[1].mxu0 }
 0x8aa   :  { %767 = vst.msk [vmem:[#allocation6] sm:$0xff] %vm766_vm13, %v763_v15 }
 0x8ab   :  { %1008 = shalt.err (!%p1005_p6)
}
 0x8ac   :  { %s1009_s28 = scalar_lea.hbm %s1441_s13, 128 }
 0x8ad   :  { %p1010_p7 = scmp.ne.s32.totalorder %s1441_s13, %s1009_s28  ;;  %p1013_p8 = scmp.lt.u32.totalorder %s1009_s28, %s1441_s13 }
 0x8af   :  { %p1015_p9 = pnand %p1013_p8, %p1010_p7 }
 0x8b1   :  { %1018 = shalt.err (!%p1015_p9)
}
 0x8b2   :  { %777 = dma.vmem_to_hbm [thread:$0]  %s775_s3, 128, %s1441_s13, [#allocation7]  }
 0x8b3   :  { %1023 = dma.done.wait [#allocation7], 128  }
 0x8b4   :  { %1024 = vsyncadd [#allocation7], 4294967168 }
 0x8b5   :  { %781 = vsyncpa [#allocation7], 1 }

</bundles_post_ra>
